<compile_context>
chip_gen: v7x
topology: tpu7x:2x2x1
jax: 0.10.0
libtpu: 0.0.40
codegen_flags: <defaults>
</compile_context>

<pallas_src>
import functools

import jax
import jax.numpy as jnp
from jax.experimental import pallas as pl
from jax.experimental.pallas import tpu as pltpu


_LANE = 128     # lane width (last dim of a vreg)
_SUBLANE = 8    # f32 sublane count (second-to-last dim)


def _round_up(n, m):
    return ((n + m - 1) // m) * m


def _pad2(a, rows, cols):
    r, c = a.shape
    return jnp.pad(a, ((0, rows - r), (0, cols - c)))


def _fused_mlp_kernel(*refs, num_layers, negative_slope, dims_pad):
    """One grid step over a batch tile:
       h = x_tile; for each layer: h = leaky_relu(h @ W_l + b_l); write h.
       Matmuls run in bf16 on the MXU with f32 accumulation; the epilogue
       (bias add + LeakyReLU) stays f32."""
    x_ref = refs[0]
    w_refs = refs[1:1 + num_layers]                  # bf16, resident in VMEM
    b_ref = refs[1 + num_layers]                     # (L, max_dout_pad), f32
    o_ref = refs[1 + num_layers + 1]

    h = x_ref[...].astype(jnp.float32)               # (tb, D0_pad) f32 activations
    for l in range(num_layers):                      # unrolled at trace time
        dout = dims_pad[l + 1]
        w = w_refs[l][...]                           # (Din_pad, Dout_pad) bf16
        b = b_ref[l:l + 1, :dout]                    # (1, Dout_pad) f32, static slice
        y = jnp.dot(h.astype(w.dtype), w,
                    preferred_element_type=jnp.float32) + b      # MXU (bf16) + f32 epilogue
        h = jnp.where(y >= 0, y, negative_slope * y)              # LeakyReLU(0.2), f32
    # NOTE: if bundle dumps ever show vreg-spill traffic at large tb/D, stage h
    # in an explicit pltpu.VMEM((tb, max_dpad), f32) scratch per layer instead.
    o_ref[...] = h.astype(o_ref.dtype)


def init_mapping_net_params(key, passwd_length, output_ncs, dtype=jnp.float32):
    """Deterministic init mirroring torch.nn.Linear defaults:
    W, b ~ U(-1/sqrt(in_features), 1/sqrt(in_features)).
    Weights stored pre-transposed as (in_features, out_features)."""
    params = []
    in_nc = passwd_length
    for out_nc in output_ncs:
        key, kw, kb = jax.random.split(key, 3)
        bound = 1.0 / jnp.sqrt(jnp.asarray(in_nc, dtype))
        w = jax.random.uniform(kw, (in_nc, out_nc), dtype, -bound, bound)
        b = jax.random.uniform(kb, (1, out_nc), dtype, -bound, bound)
        params.append((w, b))
        in_nc = out_nc
    return params


def prepare_mapping_net_params(params):
    """Pad once (lane-dense), cast weights to bf16, concatenate biases.
    Returns (ws, b_cat):
      ws    : tuple of (Din_pad, Dout_pad) bf16 weights (zero-padded rows/cols)
      b_cat : (num_layers, max_dout_pad) f32 biases (zero-padded columns)."""
    dims = [params[0][0].shape[0]] + [w.shape[1] for w, _ in params]
    dims_pad = [_round_up(d, _LANE) for d in dims]
    max_dpad = max(dims_pad[1:])
    ws, b_rows = [], []
    for l, (w, b) in enumerate(params):
        ws.append(_pad2(w, dims_pad[l], dims_pad[l + 1]).astype(jnp.bfloat16))
        b_rows.append(_pad2(b.reshape(1, -1), 1, max_dpad).astype(jnp.float32))
    b_cat = jnp.concatenate(b_rows, axis=0)
    return tuple(ws), b_cat


@functools.partial(jax.jit,
                   static_argnames=("out_dim", "negative_slope", "batch_tile"))
def mapping_net_forward(password, ws, b_cat, *, out_dim,
                        negative_slope=0.2, batch_tile=512):
    """password: (B, passwd_length) -> (B, out_dim).
    Entire (Linear + LeakyReLU) stack fused into a single Pallas kernel."""
    B, D0 = password.shape
    num_layers = len(ws)
    dims_pad = tuple([ws[0].shape[0]] + [w.shape[1] for w in ws])
    max_dpad = b_cat.shape[1]

    # Batch tiling: sublane multiple; >= 2 grid steps whenever possible so the
    # "parallel" batch axis can shard across v7x's 2 TensorCores; cap at
    # batch_tile (512 default) to fill the 256-wide MXU on v6e/v7x.
    B_pad = _round_up(B, _SUBLANE)
    if B_pad >= 2 * _SUBLANE:
        tb = min(batch_tile, _round_up(pl.cdiv(B_pad, 2), _SUBLANE))
    else:
        tb = B_pad
    B_pad = _round_up(B_pad, tb)

    x_p = jnp.pad(password.astype(jnp.float32),
                  ((0, B_pad - B), (0, dims_pad[0] - D0)))

    # Block specs. Weights & biases have constant index maps -> single buffer.
    const_buf = pl.Buffered(1)
    in_specs = [pl.BlockSpec((tb, dims_pad[0]), lambda i: (i, 0))]
    for l in range(num_layers):
        in_specs.append(pl.BlockSpec((dims_pad[l], dims_pad[l + 1]),
                                     lambda i: (0, 0),
                                     pipeline_mode=const_buf))
    in_specs.append(pl.BlockSpec((num_layers, max_dpad), lambda i: (0, 0),
                                 pipeline_mode=const_buf))

    # VMEM budget: single-buffered bf16 weights + biases, double-buffered
    # f32 x/out tiles, live-activation headroom; +20% slack.
    w_bytes = sum(w.size * w.dtype.itemsize for w in ws)
    b_bytes = b_cat.size * b_cat.dtype.itemsize
    io_bytes = 2 * tb * (dims_pad[0] + dims_pad[-1]) * 4
    act_bytes = 2 * tb * max(dims_pad) * 4
    budget = int(1.2 * (w_bytes + b_bytes + io_bytes + act_bytes))
    if budget > (64 << 20):
        # TODO(synk): stream one layer's weights per grid step (e.g. via
        # pltpu.emit_pipeline) instead of keeping the whole stack resident once
        # the net exceeds v7x's 64 MiB/TC VMEM.
        raise ValueError(
            f"MappingNet resident footprint ({budget} B) exceeds 64 MiB VMEM; "
            "switch to streaming weights per layer.")
    vmem_limit = min(max(budget, 32 << 20), 64 << 20)

    flops = sum(2 * B_pad * dims_pad[l] * dims_pad[l + 1]
                for l in range(num_layers))
    bytes_accessed = (x_p.size * 4 + w_bytes + b_bytes
                      + B_pad * dims_pad[-1] * 4)

    kernel = functools.partial(
        _fused_mlp_kernel, num_layers=num_layers,
        negative_slope=negative_slope, dims_pad=dims_pad)

    out_p = pl.pallas_call(
        kernel,
        out_shape=jax.ShapeDtypeStruct((B_pad, dims_pad[-1]), jnp.float32),
        grid=(B_pad // tb,),
        in_specs=in_specs,
        out_specs=pl.BlockSpec((tb, dims_pad[-1]), lambda i: (i, 0)),
        compiler_params=pltpu.CompilerParams(
            dimension_semantics=("parallel",),   # batch grid shards across TCs
            vmem_limit_bytes=vmem_limit,
        ),
        cost_estimate=pl.CostEstimate(
            flops=flops, transcendentals=0, bytes_accessed=bytes_accessed),
    )(x_p, *ws, b_cat)

    # Slice the lane/sublane padding back off.
    return out_p[:B, :out_dim]


if __name__ == "__main__":
    # Small shapes consistent with the module's forward:
    #   password: (B, passwd_length); output: (B, output_ncs[-1])
    B = 2
    passwd_length = 8
    output_ncs = [32, 64, 16]

    key = jax.random.PRNGKey(0)
    key, k_in = jax.random.split(key)
    password = jax.random.normal(k_in, (B, passwd_length), jnp.float32)

    params = init_mapping_net_params(key, passwd_length, output_ncs)
    ws, b_cat = prepare_mapping_net_params(params)   # pad + bf16-cast ONCE

    out = mapping_net_forward(password, ws, b_cat, out_dim=output_ncs[-1])
    out = jax.block_until_ready(out)

    # Sanity check against a pure-JAX reference of the same bf16-weight math
    # (f32 accumulation), unpadded.
    ref = password
    for w, b in params:
        ref = jnp.dot(ref.astype(jnp.bfloat16), w.astype(jnp.bfloat16),
                      preferred_element_type=jnp.float32) + b
        ref = jnp.where(ref >= 0, ref, 0.2 * ref)

    assert out.shape == (B, output_ncs[-1])
    assert jnp.allclose(out, ref, atol=1e-2, rtol=1e-2)

    print("KERNEL_OK")
</pallas_src>

<mosaic_0001>
module attributes {stable_mosaic.version = 11 : i64} {
  func.func @_fused_mlp_kernel(%arg0: i32, %arg1: memref<8x128xf32, #tpu.memory_space<vmem>>, %arg2: memref<128x128xbf16, #tpu.memory_space<vmem>>, %arg3: memref<128x128xbf16, #tpu.memory_space<vmem>>, %arg4: memref<128x128xbf16, #tpu.memory_space<vmem>>, %arg5: memref<3x128xf32, #tpu.memory_space<vmem>>, %arg6: memref<8x128xf32, #tpu.memory_space<vmem>>) attributes {dimension_semantics = [#tpu.dimension_semantics<parallel>], iteration_bounds = array<i64: 1>, scalar_prefetch = 0 : i64, scratch_operands = 0 : i64, tpu.core_type = #tpu.core_type<tc>, window_params = [{transform_indices = @transform_0, window_bounds = array<i64: 8, 128>}, {pipeline_mode = #tpu.pipeline_mode<synchronous>, transform_indices = @transform_1, window_bounds = array<i64: 128, 128>}, {pipeline_mode = #tpu.pipeline_mode<synchronous>, transform_indices = @transform_2, window_bounds = array<i64: 128, 128>}, {pipeline_mode = #tpu.pipeline_mode<synchronous>, transform_indices = @transform_3, window_bounds = array<i64: 128, 128>}, {pipeline_mode = #tpu.pipeline_mode<synchronous>, transform_indices = @transform_4, window_bounds = array<i64: 3, 128>}, {transform_indices = @transform_5, window_bounds = array<i64: 8, 128>}]} {
    %c0 = arith.constant 0 : index
    %c0_0 = arith.constant 0 : index
    %0 = vector.load %arg1[%c0, %c0_0] : memref<8x128xf32, #tpu.memory_space<vmem>>, vector<8x128xf32>
    %c0_1 = arith.constant 0 : index
    %c0_2 = arith.constant 0 : index
    %1 = vector.load %arg2[%c0_1, %c0_2] : memref<128x128xbf16, #tpu.memory_space<vmem>>, vector<128x128xbf16>
    %c0_3 = arith.constant 0 : index
    %c0_4 = arith.constant 0 : index
    %2 = vector.load %arg5[%c0_3, %c0_4] : memref<3x128xf32, #tpu.memory_space<vmem>>, vector<1x128xf32>
    %3 = arith.truncf %0 : vector<8x128xf32> to vector<8x128xbf16>
    %cst = arith.constant dense<0.000000e+00> : vector<8x128xf32>
    %4 = tpu.matmul %3, %1, %cst {dimension_numbers = #tpu.dot_dimension_numbers<[1], [0], [0], [1], [0, 0, 1, 1], [], []>} : vector<8x128xbf16>, vector<128x128xbf16>, vector<8x128xf32> -> vector<8x128xf32>
    %5 = vector.broadcast %2 : vector<1x128xf32> to vector<8x128xf32>
    %6 = arith.addf %4, %5 : vector<8x128xf32>
    %cst_5 = arith.constant 0.000000e+00 : f32
    %7 = vector.broadcast %cst_5 : f32 to vector<8x128xf32>
    %8 = arith.cmpf oge, %6, %7 : vector<8x128xf32>
    %cst_6 = arith.constant 2.000000e-01 : f32
    %9 = vector.broadcast %cst_6 : f32 to vector<8x128xf32>
    %10 = arith.mulf %9, %6 : vector<8x128xf32>
    %11 = arith.select %8, %6, %10 : vector<8x128xi1>, vector<8x128xf32>
    %c0_7 = arith.constant 0 : index
    %c0_8 = arith.constant 0 : index
    %12 = vector.load %arg3[%c0_7, %c0_8] : memref<128x128xbf16, #tpu.memory_space<vmem>>, vector<128x128xbf16>
    %c1 = arith.constant 1 : index
    %c0_9 = arith.constant 0 : index
    %13 = vector.load %arg5[%c1, %c0_9] : memref<3x128xf32, #tpu.memory_space<vmem>>, vector<1x128xf32>
    %14 = arith.truncf %11 : vector<8x128xf32> to vector<8x128xbf16>
    %cst_10 = arith.constant dense<0.000000e+00> : vector<8x128xf32>
    %15 = tpu.matmul %14, %12, %cst_10 {dimension_numbers = #tpu.dot_dimension_numbers<[1], [0], [0], [1], [0, 0, 1, 1], [], []>} : vector<8x128xbf16>, vector<128x128xbf16>, vector<8x128xf32> -> vector<8x128xf32>
    %16 = vector.broadcast %13 : vector<1x128xf32> to vector<8x128xf32>
    %17 = arith.addf %15, %16 : vector<8x128xf32>
    %cst_11 = arith.constant 0.000000e+00 : f32
    %18 = vector.broadcast %cst_11 : f32 to vector<8x128xf32>
    %19 = arith.cmpf oge, %17, %18 : vector<8x128xf32>
    %cst_12 = arith.constant 2.000000e-01 : f32
    %20 = vector.broadcast %cst_12 : f32 to vector<8x128xf32>
    %21 = arith.mulf %20, %17 : vector<8x128xf32>
    %22 = arith.select %19, %17, %21 : vector<8x128xi1>, vector<8x128xf32>
    %c0_13 = arith.constant 0 : index
    %c0_14 = arith.constant 0 : index
    %23 = vector.load %arg4[%c0_13, %c0_14] : memref<128x128xbf16, #tpu.memory_space<vmem>>, vector<128x128xbf16>
    %c2 = arith.constant 2 : index
    %c0_15 = arith.constant 0 : index
    %24 = vector.load %arg5[%c2, %c0_15] : memref<3x128xf32, #tpu.memory_space<vmem>>, vector<1x128xf32>
    %25 = arith.truncf %22 : vector<8x128xf32> to vector<8x128xbf16>
    %cst_16 = arith.constant dense<0.000000e+00> : vector<8x128xf32>
    %26 = tpu.matmul %25, %23, %cst_16 {dimension_numbers = #tpu.dot_dimension_numbers<[1], [0], [0], [1], [0, 0, 1, 1], [], []>} : vector<8x128xbf16>, vector<128x128xbf16>, vector<8x128xf32> -> vector<8x128xf32>
    %27 = vector.broadcast %24 : vector<1x128xf32> to vector<8x128xf32>
    %28 = arith.addf %26, %27 : vector<8x128xf32>
    %cst_17 = arith.constant 0.000000e+00 : f32
    %29 = vector.broadcast %cst_17 : f32 to vector<8x128xf32>
    %30 = arith.cmpf oge, %28, %29 : vector<8x128xf32>
    %cst_18 = arith.constant 2.000000e-01 : f32
    %31 = vector.broadcast %cst_18 : f32 to vector<8x128xf32>
    %32 = arith.mulf %31, %28 : vector<8x128xf32>
    %33 = arith.select %30, %28, %32 : vector<8x128xi1>, vector<8x128xf32>
    %c0_19 = arith.constant 0 : index
    %c0_20 = arith.constant 0 : index
    %34 = vector.load %arg6[%c0_19, %c0_20] : memref<8x128xf32, #tpu.memory_space<vmem>>, vector<8x128xf32>
    tpu.vector_store %arg6[%c0_19, %c0_20], %33 {strides = array<i32>} : memref<8x128xf32, #tpu.memory_space<vmem>>, vector<8x128xf32>,
    return
  }
  func.func @transform_0(%arg0: i32) -> (i32, i32) {
    %c0_i32 = arith.constant 0 : i32
    %c0_i32_0 = arith.constant 0 : i32
    return %arg0, %c0_i32 : i32, i32
  }
  func.func @transform_1(%arg0: i32) -> (i32, i32) {
    %c0_i32 = arith.constant 0 : i32
    %c0_i32_0 = arith.constant 0 : i32
    %c0_i32_1 = arith.constant 0 : i32
    return %c0_i32, %c0_i32_0 : i32, i32
  }
  func.func @transform_2(%arg0: i32) -> (i32, i32) {
    %c0_i32 = arith.constant 0 : i32
    %c0_i32_0 = arith.constant 0 : i32
    %c0_i32_1 = arith.constant 0 : i32
    return %c0_i32, %c0_i32_0 : i32, i32
  }
  func.func @transform_3(%arg0: i32) -> (i32, i32) {
    %c0_i32 = arith.constant 0 : i32
    %c0_i32_0 = arith.constant 0 : i32
    %c0_i32_1 = arith.constant 0 : i32
    return %c0_i32, %c0_i32_0 : i32, i32
  }
  func.func @transform_4(%arg0: i32) -> (i32, i32) {
    %c0_i32 = arith.constant 0 : i32
    %c0_i32_0 = arith.constant 0 : i32
    %c0_i32_1 = arith.constant 0 : i32
    return %c0_i32, %c0_i32_0 : i32, i32
  }
  func.func @transform_5(%arg0: i32) -> (i32, i32) {
    %c0_i32 = arith.constant 0 : i32
    %c0_i32_0 = arith.constant 0 : i32
    return %arg0, %c0_i32 : i32, i32
  }
}

</mosaic_0001>

<bundles_post_ra>
// kernel: mapping_net_forward.1
= control target key start
LH: loop header
LB: loop body
LE: loop exit
PB: predicated region body
PF: predicated region fallthrough
CT: control target
= control target key end

     0   :  { %10 = vsyncpa [#allocation3], 0  ;;  %s758_s0 = inlined_call_operand.vmem [shape: f32[8,128], index: 0, kind: input, shape index: {}]   ;;  %s759_s1 = inlined_call_operand.hbm [shape: bf16[128,128], index: 1, kind: input, shape index: {}]   ;;  %s760_s2 = inlined_call_operand.hbm [shape: bf16[128,128], index: 2, kind: input, shape index: {}]   ;;  %s761_s3 = inlined_call_operand.hbm [shape: bf16[128,128], index: 3, kind: input, shape index: {}]   ;;  %s762_s4 = inlined_call_operand.vmem [shape: f32[3,128], index: 4, kind: input, shape index: {}]   ;;  %s763_s5 = inlined_call_operand.vmem [shape: f32[8,128], index: 5, kind: output, shape index: {}]  }
   0x1   :  { %11 = vsyncpa [#allocation5], 0  ;;  %s624_s18 = smov [#allocation4]   ;;  %s625_s20 = smov [#allocation2]  }
   0x2   :  { %s31_s19 = sshll.u32 %s624_s18, 4  ;;  %s19_s21 = sshll.u32 %s625_s20, 4  ;;  %s32_s19 = int_to_ptr.vmem [resolvable:$true] %s31_s19  ;;  %s661_s21 = int_to_ptr.vmem [resolvable:$true] %s19_s21 }
   0x3   :  { %s554_s24 = scalar_lea.hbm %s760_s2, 1024 }
   0x4   :  { %p555_p0 = scmp.ne.s32.totalorder %s760_s2, %s554_s24  ;;  %p558_p1 = scmp.lt.u32.totalorder %s554_s24, %s760_s2 }
   0x6   :  { %p560_p2 = pnand %p558_p1, %p555_p0 }
   0x8   :  { %563 = shalt.err (!%p560_p2)
}
   0x9   :  { %s564_s29 = scalar_lea.vmem %s32_s19, 1024  ;;  %p569_p4 = scmp.lt.s32.totalorder %s32_s19, %s32_s19 }
   0xa   :  { %p565_p3 = scmp.ne.s32.totalorder %s32_s19, %s564_s29  ;;  %p570_p5 = scmp.lt.s32.totalorder %s564_s29, %s564_s29 }
   0xc   :  { %p571_p6 = por %p570_p5, %p569_p4 }
   0xe   :  { %p572_p7 = pnand %p571_p6, %p565_p3 }
  0x10   :  { %575 = shalt.err (!%p572_p7)
}
  0x11   :  { %s626_s30 = smov 64   ;;  %s627_s6 = smov 4  }
  0x12   :  { %37 = dma.hbm_to_vmem [thread:$0]  %s760_s2, 1024, %s32_s19, [#allocation5], %s626_s30, %s626_s30, %s627_s6  }
  0x13   :  { %s576_s11 = scalar_lea.hbm %s759_s1, 1024 }
  0x14   :  { %p577_p8 = scmp.ne.s32.totalorder %s759_s1, %s576_s11  ;;  %p580_p9 = scmp.lt.u32.totalorder %s576_s11, %s759_s1 }
  0x16   :  { %p582_p10 = pnand %p580_p9, %p577_p8 }
  0x18   :  { %585 = shalt.err (!%p582_p10)
}
  0x19   :  { %s586_s16 = scalar_lea.vmem %s661_s21, 1024  ;;  %p591_p12 = scmp.lt.s32.totalorder %s661_s21, %s661_s21 }
  0x1a   :  { %p587_p11 = scmp.ne.s32.totalorder %s661_s21, %s586_s16  ;;  %p592_p13 = scmp.lt.s32.totalorder %s586_s16, %s586_s16 }
  0x1c   :  { %p593_p0 = por %p592_p13, %p591_p12 }
  0x1e   :  { %p594_p1 = pnand %p593_p0, %p587_p11 }
  0x20   :  { %597 = shalt.err (!%p594_p1)
}
  0x21   :  { %25 = dma.hbm_to_vmem [thread:$0]  %s759_s1, 1024, %s661_s21, [#allocation3], %s626_s30, %s626_s30, %s627_s6  }
  0x22   :  { %s628_s18 = smov [#allocation6]   ;;  %s598_s23 = scalar_lea.hbm %s761_s3, 1024 }
  0x23   :  { %s43_s19 = sshll.u32 %s628_s18, 4  ;;  %p599_p2 = scmp.ne.s32.totalorder %s761_s3, %s598_s23  ;;  %s44_s19 = int_to_ptr.vmem [resolvable:$true] %s43_s19 }
  0x24   :  { %p602_p3 = scmp.lt.u32.totalorder %s598_s23, %s761_s3 }
  0x26   :  { %p604_p4 = pnand %p602_p3, %p599_p2 }
  0x28   :  { %607 = shalt.err (!%p604_p4)
}
  0x29   :  { %s608_s28 = scalar_lea.vmem %s44_s19, 1024  ;;  %p613_p6 = scmp.lt.s32.totalorder %s44_s19, %s44_s19 }
  0x2a   :  { %p609_p5 = scmp.ne.s32.totalorder %s44_s19, %s608_s28  ;;  %p614_p7 = scmp.lt.s32.totalorder %s608_s28, %s608_s28 }
  0x2c   :  { %p615_p8 = por %p614_p7, %p613_p6 }
  0x2e   :  { %p616_p9 = pnand %p615_p8, %p609_p5 }
  0x30   :  { %619 = shalt.err (!%p616_p9)
}
  0x31   :  { %49 = dma.hbm_to_vmem [thread:$0]  %s761_s3, 1024, %s44_s19, [#allocation5], %s626_s30, %s626_s30, %s627_s6  }
  0x32   :  { %620 = dma.done.wait [#allocation3], 1024  }
  0x33   :  { %621 = vsyncadd [#allocation3], 4294966272 }
  0x34   :  { %622 = dma.done.wait [#allocation5], 2048  }
  0x35   :  { %623 = vsyncadd [#allocation5], 4294965248  ;;  %v629_v0 = vmov 0.0   ;;  %vm630_vm0 = vmmov 0   ;;  %v530_v1 = vld [vmem:[#allocation2] sm:$0xff]   ;;  %v531_v2 = vld [vmem:[#allocation2 + $0x8] sm:$0xff]  }
  0x36   :  { %463 = vmatprep.subr.bf16.mxu0 %v629_v0  ;;  %479 = vmatprep.mubr.msk.bf16.mxu0 %vm630_vm0, %v629_v0  ;;  %v532_v3 = vld [vmem:[#allocation2 + $0x10] sm:$0xff]   ;;  %v538_v4 = vld [vmem:[#allocation4] sm:$0xff]   ;;  %v533_v5 = vld [vmem:[#allocation2 + $0x18] sm:$0xff]  }
  0x37   :  { %483 = vmatprep.subr.bf16.mxu1 %v629_v0  ;;  %499 = vmatprep.mubr.msk.bf16.mxu1 %vm630_vm0, %v629_v0  ;;  %v539_v6 = vld [vmem:[#allocation4 + $0x8] sm:$0xff]   ;;  %v534_v7 = vld [vmem:[#allocation2 + $0x20] sm:$0xff]   ;;  %v540_v8 = vld [vmem:[#allocation4 + $0x10] sm:$0xff]  }
  0x38   :  { %464 = vmatpush3.bf16.msra.mxu0 %v530_v1  ;;  %484 = vmatpush3.bf16.msra.mxu1 %v538_v4  ;;  %v535_v9 = vld [vmem:[#allocation2 + $0x28] sm:$0xff]   ;;  %v541_v10 = vld [vmem:[#allocation4 + $0x18] sm:$0xff]   ;;  %v536_v11 = vld [vmem:[#allocation2 + $0x30] sm:$0xff]  }
  0x39   :  { %465 = vmatprep.subr.bf16.mxu0 %v629_v0  ;;  %485 = vmatprep.subr.bf16.mxu1 %v629_v0  ;;  %v542_v12 = vld [vmem:[#allocation4 + $0x20] sm:$0xff]   ;;  %v537_v13 = vld [vmem:[#allocation2 + $0x38] sm:$0xff]   ;;  %v543_v15 = vld [vmem:[#allocation4 + $0x28] sm:$0xff]  }
  0x3a   :  { %v62_v14 = vld [vmem:[%s758_s0] sm:$0xff]  ;;  %v544_v17 = vld [vmem:[#allocation4 + $0x30] sm:$0xff]   ;;  %v545_v18 = vld [vmem:[#allocation4 + $0x38] sm:$0xff]  }
  0x3b   :  { %v80_v16 = vpack.c.bf16 %v62_v14, %v62_v14  ;;  %v546_v19 = vld [vmem:[#allocation6] sm:$0xff]   ;;  %v547_v20 = vld [vmem:[#allocation6 + $0x8] sm:$0xff]   ;;  %v548_v21 = vld [vmem:[#allocation6 + $0x10] sm:$0xff]  }
  0x3c   :  { %466 = vmatpush3.bf16.msra.mxu0 %v531_v2  ;;  %486 = vmatpush3.bf16.msra.mxu1 %v539_v6  ;;  %v549_v22 = vld [vmem:[#allocation6 + $0x18] sm:$0xff]   ;;  %v550_v23 = vld [vmem:[#allocation6 + $0x20] sm:$0xff]   ;;  %v551_v24 = vld [vmem:[#allocation6 + $0x28] sm:$0xff]  }
  0x3d   :  { %467 = vmatprep.subr.bf16.mxu0 %v629_v0  ;;  %487 = vmatprep.subr.bf16.mxu1 %v629_v0  ;;  %v409_v25 = vld [vmem:[%s762_s4] ss:$0 sm:$0xff]  ;;  %v552_v34 = vld [vmem:[#allocation6 + $0x30] sm:$0xff]   ;;  %v553_v35 = vld [vmem:[#allocation6 + $0x38] sm:$0xff]  }
  0x3e   :  { %v418_v36 = vld [vmem:[%s762_s4 + $0x1] ss:$0 sm:$0xff]  ;;  %v427_v45 = vld [vmem:[%s762_s4 + $0x2] ss:$0 sm:$0xff] }
  0x40   :  { %468 = vmatpush3.bf16.msra.mxu0 %v532_v3  ;;  %488 = vmatpush3.bf16.msra.mxu1 %v540_v8 }
  0x41   :  { %469 = vmatprep.subr.bf16.mxu0 %v629_v0  ;;  %489 = vmatprep.subr.bf16.mxu1 %v629_v0 }
  0x44   :  { %470 = vmatpush3.bf16.msra.mxu0 %v533_v5  ;;  %490 = vmatpush3.bf16.msra.mxu1 %v541_v10 }
  0x45   :  { %471 = vmatprep.subr.bf16.mxu0 %v629_v0  ;;  %491 = vmatprep.subr.bf16.mxu1 %v629_v0 }
  0x48   :  { %472 = vmatpush3.bf16.msra.mxu0 %v534_v7  ;;  %492 = vmatpush3.bf16.msra.mxu1 %v542_v12 }
  0x49   :  { %473 = vmatprep.subr.bf16.mxu0 %v629_v0  ;;  %493 = vmatprep.subr.bf16.mxu1 %v629_v0 }
  0x4c   :  { %474 = vmatpush3.bf16.msra.mxu0 %v535_v9  ;;  %494 = vmatpush3.bf16.msra.mxu1 %v543_v15 }
  0x4d   :  { %475 = vmatprep.subr.bf16.mxu0 %v629_v0  ;;  %495 = vmatprep.subr.bf16.mxu1 %v629_v0 }
  0x50   :  { %476 = vmatpush3.bf16.msra.mxu0 %v536_v11  ;;  %496 = vmatpush3.bf16.msra.mxu1 %v544_v17 }
  0x51   :  { %477 = vmatprep.subr.bf16.mxu0 %v629_v0  ;;  %497 = vmatprep.subr.bf16.mxu1 %v629_v0 }
  0x54   :  { %478 = vmatpush3.bf16.msra.mxu0 %v537_v13  ;;  %498 = vmatpush3.bf16.msra.mxu1 %v545_v18 }
  0x55   :  { %503 = vmatprep.subr.bf16.mxu0 %v629_v0 }
  0x57   :  { %480 = vmatmul.mubr.bf16.vlgmr.msra.gmra.mrb[0].mxu0 %v80_v16 }
  0x58   :  { %519 = vmatprep.mubr.msk.bf16.mxu0 %vm630_vm0, %v629_v0  ;;  %504 = vmatpush3.bf16.msra.mxu0 %v546_v19 }
  0x59   :  { %505 = vmatprep.subr.bf16.mxu0 %v629_v0 }
  0x5c   :  { %506 = vmatpush3.bf16.msra.mxu0 %v547_v20 }
  0x5d   :  { %507 = vmatprep.subr.bf16.mxu0 %v629_v0 }
  0x60   :  { %508 = vmatpush3.bf16.msra.mxu0 %v548_v21 }
  0x61   :  { %509 = vmatprep.subr.bf16.mxu0 %v629_v0 }
  0x64   :  { %510 = vmatpush3.bf16.msra.mxu0 %v549_v22 }
  0x65   :  { %511 = vmatprep.subr.bf16.mxu0 %v629_v0 }
  0x68   :  { %512 = vmatpush3.bf16.msra.mxu0 %v550_v23 }
  0x69   :  { %513 = vmatprep.subr.bf16.mxu0 %v629_v0 }
  0x6c   :  { %514 = vmatpush3.bf16.msra.mxu0 %v551_v24 }
  0x6d   :  { %515 = vmatprep.subr.bf16.mxu0 %v629_v0 }
  0x70   :  { %516 = vmatpush3.bf16.msra.mxu0 %v552_v34 }
  0x71   :  { %517 = vmatprep.subr.bf16.mxu0 %v629_v0 }
  0x74   :  { %518 = vmatpush3.bf16.msra.mxu0 %v553_v35 }
 0x12a   :  { %v167_v26 = vpop.f32.mrb[0].mxu0 }
 0x12b   :  { %v168_v27 = vadd.f32 %v409_v25, %v167_v26  ;;  %v481_v28 = vpop.f32.mrb[1].mxu0 }
 0x12c   :  { %v170_v29 = vpop.f32.mrb[2].mxu0 }
 0x12d   :  { %vm173_vm1 = vcmp.ge.f32.partialorder %v168_v27, 0.0  ;;  %v174_v30 = vmul.f32 0.2, %v168_v27  ;;  %v482_v31 = vpop.f32.mrb[3].mxu0 }
 0x12f   :  { %v175_v32 = vsel %vm173_vm1, %v168_v27, %v174_v30 }
 0x130   :  { %v193_v33 = vpack.c.bf16 %v175_v32, %v175_v32 }
 0x132   :  { %500 = vmatmul.mubr.bf16.vlgmr.msra.gmra.mrb[0].mxu1 %v193_v33 }
 0x205   :  { %v280_v37 = vpop.f32.mrb[0].mxu1 }
 0x206   :  { %v281_v38 = vadd.f32 %v418_v36, %v280_v37  ;;  %v501_v39 = vpop.f32.mrb[1].mxu1 }
 0x207   :  { %v283_v40 = vpop.f32.mrb[2].mxu1 }
 0x208   :  { %vm286_vm2 = vcmp.ge.f32.partialorder %v281_v38, 0.0  ;;  %v287_v41 = vmul.f32 0.2, %v281_v38  ;;  %v502_v42 = vpop.f32.mrb[3].mxu1 }
 0x20a   :  { %v288_v43 = vsel %vm286_vm2, %v281_v38, %v287_v41 }
 0x20b   :  { %v306_v44 = vpack.c.bf16 %v288_v43, %v288_v43 }
 0x20d   :  { %520 = vmatmul.mubr.bf16.vlgmr.msra.gmra.mrb[4].mxu0 %v306_v44 }
 0x2e0   :  { %v393_v46 = vpop.f32.mrb[4].mxu0 }
 0x2e1   :  { %v394_v47 = vadd.f32 %v427_v45, %v393_v46  ;;  %v521_v48 = vpop.f32.mrb[5].mxu0 }
 0x2e2   :  { %v396_v49 = vpop.f32.mrb[6].mxu0 }
 0x2e3   :  { %vm399_vm3 = vcmp.ge.f32.partialorder %v394_v47, 0.0  ;;  %v400_v50 = vmul.f32 0.2, %v394_v47  ;;  %v522_v51 = vpop.f32.mrb[7].mxu0 }
 0x2e5   :  { %v401_v52 = vsel %vm399_vm3, %v394_v47, %v400_v50 }
 0x2e6   :  { %402 = vst [vmem:[%s763_s5] sm:$0xff] %v401_v52 }
 0x2e7   :  { %407 = vsyncpa [#allocation3], 1 }
 0x2e8   :  { %408 = vsyncpa [#allocation5], 1 }

</bundles_post_ra>
